<compile_context>
chip_gen: v5e
topology: v5e:2x2
jax: 0.10.0
libtpu: 0.0.40
codegen_flags: <defaults>
</compile_context>

<pallas_src>
import functools

import jax
import jax.numpy as jnp
from jax.experimental import pallas as pl
from jax.experimental.pallas import tpu as pltpu


def _round_up(x, m):
    return ((x + m - 1) // m) * m


def _batch_tiling(B, block_b):
    """Pick (TB, nb, Bp): sublane-aligned batch tile that minimizes padding.

    Ensures nb >= 2 whenever the (8-aligned) batch allows it, so the
    "parallel" grid axis can be split across v7x's two TensorCores.
    """
    Bp8 = _round_up(max(B, 1), 8)
    nb = pl.cdiv(Bp8, block_b)
    if Bp8 >= 16:
        nb = max(nb, 2)
    TB = _round_up(pl.cdiv(Bp8, nb), 8)
    nb = pl.cdiv(Bp8, TB)
    if Bp8 >= 16:
        nb = max(nb, 2)
    return TB, nb, nb * TB


def _classifier_kernel(x_ref, w_ref, b_ref, o_ref):
    # f32 operands arrive straight from HBM; cast to bf16 here (no separate
    # XLA convert op / extra HBM round trip). MXU matmul with f32 accumulation,
    # bias add and store in f32 (or out_dtype).
    x = x_ref[...].astype(jnp.bfloat16)          # (TB, D)
    w = w_ref[...].astype(jnp.bfloat16)          # (D, Lp) - MXU-natural feed
    acc = jnp.dot(x, w, preferred_element_type=jnp.float32)
    o_ref[...] = (acc + b_ref[...]).astype(o_ref.dtype)


@functools.partial(jax.jit, static_argnames=("block_b", "out_dtype"))
def single_layer_classifier(pooled_output, weight, bias, *, block_b=512,
                            out_dtype=None):
    """Forward pass of SingleLayerClassifier (eval mode).

    pooled_output: (B, D) float32
    weight:        (L, D) float32   (PyTorch nn.Linear convention)
    bias:          (L,)   float32
    returns:       (B, L) out_dtype (default: pooled_output.dtype)
    """
    B, D = pooled_output.shape
    L = weight.shape[0]
    if out_dtype is None:
        out_dtype = pooled_output.dtype
    out_itemsize = jnp.dtype(out_dtype).itemsize

    # Lane-dense output / weight columns: pad label dim up to a multiple of 128.
    Lp = _round_up(L, 128)
    # Padding-aware batch tiling (TB multiple of 8, nb grid steps).
    TB, nb, Bp = _batch_tiling(B, block_b)

    x = pooled_output
    if Bp != B:
        x = jnp.pad(x, ((0, Bp - B), (0, 0)))

    # Pad label dim and pre-transpose ONCE to (D, Lp): MXU-natural (M,K)x(K,N)
    # feed, no per-grid-step relayout of the resident weight inside the kernel.
    # Grid-invariant, so under jit this is a single fused pad+transpose.
    w = weight
    b = bias
    if Lp != L:
        w = jnp.pad(w, ((0, Lp - L), (0, 0)))
        b = jnp.pad(b, ((0, Lp - L),))
    w_t = w.T                                     # (D, Lp) f32
    b2 = b.reshape(1, Lp).astype(jnp.float32)     # (1, Lp) f32

    cost = pl.CostEstimate(
        flops=2 * Bp * D * Lp,
        transcendentals=0,
        bytes_accessed=(Bp * D * x.dtype.itemsize          # activations (f32)
                        + D * Lp * w_t.dtype.itemsize      # weight (f32, once)
                        + Lp * 4                            # bias
                        + Bp * Lp * out_itemsize),          # logits
    )

    # Double-buffered VMEM footprint; only raise the scoped-VMEM limit when the
    # default (16 MiB v5e / 32 MiB v6e,v7x) would be exceeded.
    vmem_bytes = (2 * TB * D * x.dtype.itemsize
                  + 2 * D * Lp * w_t.dtype.itemsize
                  + 2 * Lp * 4
                  + 2 * TB * Lp * out_itemsize)
    vmem_limit = None
    if vmem_bytes > (12 << 20):
        vmem_limit = min(int(vmem_bytes * 1.25) + (2 << 20), 100 << 20)
    # TODO(synk): add a label-dimension grid axis for very large heads where
    # the resident (D, Lp) weight no longer fits VMEM (hits first on v7x's
    # 64 MiB/TC).

    out_padded = pl.pallas_call(
        _classifier_kernel,
        out_shape=jax.ShapeDtypeStruct((Bp, Lp), out_dtype),
        grid_spec=pl.GridSpec(
            grid=(nb,),
            in_specs=[
                pl.BlockSpec((TB, D), lambda i: (i, 0)),   # activations: batch-tiled
                pl.BlockSpec((D, Lp), lambda i: (0, 0)),   # weight: VMEM-resident
                pl.BlockSpec((1, Lp), lambda i: (0, 0)),   # bias: VMEM-resident
            ],
            out_specs=pl.BlockSpec((TB, Lp), lambda i: (i, 0)),
        ),
        compiler_params=pltpu.CompilerParams(
            dimension_semantics=("parallel",),
            allow_input_fusion=(True, True, True),
            vmem_limit_bytes=vmem_limit,
        ),
        cost_estimate=cost,
    )(x, w_t, b2)

    return out_padded[:B, :L]


if __name__ == "__main__":
    # Small shapes consistent with the module: batch=8, input_size=128,
    # num_labels=16.
    B, D, L = 8, 128, 16

    key = jax.random.PRNGKey(0)
    k_x, k_w, k_b = jax.random.split(key, 3)

    # Deterministic parameter init mimicking nn.Linear's default
    # uniform(-1/sqrt(in_features), 1/sqrt(in_features)).
    bound = 1.0 / (D ** 0.5)
    weight = jax.random.uniform(k_w, (L, D), jnp.float32, -bound, bound)
    bias = jax.random.uniform(k_b, (L,), jnp.float32, -bound, bound)
    pooled_output = jax.random.normal(k_x, (B, D), jnp.float32)

    out = single_layer_classifier(pooled_output, weight, bias)
    out = jax.block_until_ready(out)

    assert out.shape == (B, L)

    # Reference check (eval-mode dropout == identity). Loose tolerance against
    # the f32 reference (kernel uses bf16 MXU operands) ...
    ref_f32 = pooled_output @ weight.T + bias
    assert jnp.allclose(out, ref_f32, atol=5e-2, rtol=5e-2)

    # ... and a tighter check against a bf16-rounded-input reference.
    ref_bf16 = (pooled_output.astype(jnp.bfloat16).astype(jnp.float32)
                @ weight.astype(jnp.bfloat16).astype(jnp.float32).T + bias)
    assert jnp.allclose(out, ref_bf16, atol=2e-3, rtol=2e-3)

    print("KERNEL_OK")
</pallas_src>

<mosaic_0001>
module attributes {stable_mosaic.version = 11 : i64} {
  func.func @_classifier_kernel(%arg0: i32, %arg1: memref<8x128xf32, #tpu.memory_space<vmem>>, %arg2: memref<128x128xf32, #tpu.memory_space<vmem>>, %arg3: memref<1x128xf32, #tpu.memory_space<vmem>>, %arg4: memref<8x128xf32, #tpu.memory_space<vmem>>) attributes {dimension_semantics = [#tpu.dimension_semantics<parallel>], iteration_bounds = array<i64: 1>, scalar_prefetch = 0 : i64, scratch_operands = 0 : i64, tpu.core_type = #tpu.core_type<tc>, window_params = [{transform_indices = @transform_0, window_bounds = array<i64: 8, 128>}, {pipeline_mode = #tpu.pipeline_mode<synchronous>, transform_indices = @transform_1, window_bounds = array<i64: 128, 128>}, {pipeline_mode = #tpu.pipeline_mode<synchronous>, transform_indices = @transform_2, window_bounds = array<i64: 1, 128>}, {transform_indices = @transform_3, window_bounds = array<i64: 8, 128>}]} {
    %c0 = arith.constant 0 : index
    %c0_0 = arith.constant 0 : index
    %0 = vector.load %arg1[%c0, %c0_0] : memref<8x128xf32, #tpu.memory_space<vmem>>, vector<8x128xf32>
    %1 = arith.truncf %0 : vector<8x128xf32> to vector<8x128xbf16>
    %c0_1 = arith.constant 0 : index
    %c0_2 = arith.constant 0 : index
    %2 = vector.load %arg2[%c0_1, %c0_2] : memref<128x128xf32, #tpu.memory_space<vmem>>, vector<128x128xf32>
    %3 = arith.truncf %2 : vector<128x128xf32> to vector<128x128xbf16>
    %cst = arith.constant dense<0.000000e+00> : vector<8x128xf32>
    %4 = tpu.matmul %1, %3, %cst {dimension_numbers = #tpu.dot_dimension_numbers<[1], [0], [0], [1], [0, 0, 1, 1], [], []>} : vector<8x128xbf16>, vector<128x128xbf16>, vector<8x128xf32> -> vector<8x128xf32>
    %c0_3 = arith.constant 0 : index
    %c0_4 = arith.constant 0 : index
    %5 = vector.load %arg3[%c0_3, %c0_4] : memref<1x128xf32, #tpu.memory_space<vmem>>, vector<1x128xf32>
    %6 = vector.broadcast %5 : vector<1x128xf32> to vector<8x128xf32>
    %7 = arith.addf %4, %6 : vector<8x128xf32>
    %c0_5 = arith.constant 0 : index
    %c0_6 = arith.constant 0 : index
    %8 = vector.load %arg4[%c0_5, %c0_6] : memref<8x128xf32, #tpu.memory_space<vmem>>, vector<8x128xf32>
    tpu.vector_store %arg4[%c0_5, %c0_6], %7 {strides = array<i32>} : memref<8x128xf32, #tpu.memory_space<vmem>>, vector<8x128xf32>,
    return
  }
  func.func @transform_0(%arg0: i32) -> (i32, i32) {
    %c0_i32 = arith.constant 0 : i32
    %c0_i32_0 = arith.constant 0 : i32
    return %arg0, %c0_i32 : i32, i32
  }
  func.func @transform_1(%arg0: i32) -> (i32, i32) {
    %c0_i32 = arith.constant 0 : i32
    %c0_i32_0 = arith.constant 0 : i32
    %c0_i32_1 = arith.constant 0 : i32
    return %c0_i32, %c0_i32_0 : i32, i32
  }
  func.func @transform_2(%arg0: i32) -> (i32, i32) {
    %c0_i32 = arith.constant 0 : i32
    %c0_i32_0 = arith.constant 0 : i32
    %c0_i32_1 = arith.constant 0 : i32
    return %c0_i32, %c0_i32_0 : i32, i32
  }
  func.func @transform_3(%arg0: i32) -> (i32, i32) {
    %c0_i32 = arith.constant 0 : i32
    %c0_i32_0 = arith.constant 0 : i32
    return %arg0, %c0_i32 : i32, i32
  }
}

</mosaic_0001>

<bundles_post_ra>
// kernel: single_layer_classifier.2
= control target key start
LH: loop header
LB: loop body
LE: loop exit
PB: predicated region body
PF: predicated region fallthrough
CT: control target
= control target key end

     0   :  { %s405_s0 = inlined_call_operand.vmem [shape: f32[8,128], index: 0, kind: input, shape index: {}]   ;;  %s406_s1 = inlined_call_operand.vmem [shape: f32[16,128], index: 1, kind: input, shape index: {}]   ;;  %s407_s2 = inlined_call_operand.<no memory space> [shape: f32[], index: 2, kind: input, shape index: {}]   ;;  %s408_s3 = inlined_call_operand.vmem [shape: f32[16], index: 3, kind: input, shape index: {}]   ;;  %s409_s4 = inlined_call_operand.hbm [shape: f32[8,128], index: 4, kind: output, shape index: {}]  }
   0x1   :  { %v9_v0 = vstv %s407_s2 }
   0x2   :  { %v19_v1 = vlaneseq  ;;  %v273_v2 = vld [vmem:[%s406_s1 + $0x70] sm:$0xff]  ;;  %v274_v4 = vld [vmem:[%s406_s1 + $0x78] sm:$0xff]  ;;  %v271_v5 = vld [vmem:[%s406_s1 + $0x60] sm:$0xff] }
   0x3   :  { %v272_v6 = vld [vmem:[%s406_s1 + $0x68] sm:$0xff] }
   0x4   :  { %v20_v3 = vand.u32 127, %v19_v1 }
   0x6   :  { %vm22_vm0 = vcmp.lt.s32.totalorder %v20_v3, 16 }
   0x7   :  { %v176_v7 = vsel %vm22_vm0, %v273_v2, %v9_v0  ;;  %v187_v8 = vsel %vm22_vm0, %v274_v4, %v9_v0  ;;  %v154_v9 = vsel %vm22_vm0, %v271_v5, %v9_v0  ;;  %v165_v10 = vsel %vm22_vm0, %v272_v6, %v9_v0 }
   0x8   :  { %11 = vsyncpa [#allocation13], 0  ;;  %v225_v11 = vpack.c.bf16 %v187_v8, %v176_v7  ;;  %v269_v12 = vld [vmem:[%s406_s1 + $0x50] sm:$0xff]  ;;  %v270_v13 = vld [vmem:[%s406_s1 + $0x58] sm:$0xff]  ;;  %v224_v14 = vpack.c.bf16 %v165_v10, %v154_v9  ;;  %vm195_vm1 = vcmp.lt.s32.totalorder %v19_v1, 16  ;;  %s303_s2 = smov [#allocation12]  }
   0x9   :  { %v132_v15 = vsel %vm22_vm0, %v269_v12, %v9_v0  ;;  %v143_v16 = vsel %vm22_vm0, %v270_v13, %v9_v0  ;;  %v192_v17 = vld [vmem:[%s408_s3] sm:$0x1]  ;;  %v268_v19 = vld [vmem:[%s406_s1 + $0x48] sm:$0xff]  ;;  %v265_v24 = vld [vmem:[%s406_s1 + $0x30] sm:$0xff]  ;;  %s249_s25 = sshll.u32 %s303_s2, 4  ;;  %s251_s27 = sshll.u32 %s409_s4, 4  ;;  %s250_s25 = int_to_ptr.vmem [resolvable:$true] %s249_s25  ;;  %s252_s27 = int_to_ptr.hbm [resolvable:$true] %s251_s27 }
   0xa   :  { %230 = vmatpush.bf16.msra.mxu0 %v225_v11  ;;  %v267_v18 = vld [vmem:[%s406_s1 + $0x40] sm:$0xff]  ;;  %v223_v20 = vpack.c.bf16 %v143_v16, %v132_v15  ;;  %v196_v21 = vsel %vm195_vm1, %v192_v17, %v9_v0  ;;  %v121_v23 = vsel %vm22_vm0, %v268_v19, %v9_v0  ;;  %v266_v25 = vld [vmem:[%s406_s1 + $0x38] sm:$0xff]  ;;  %v88_v27 = vsel %vm22_vm0, %v265_v24, %v9_v0  ;;  %v264_v30 = vld [vmem:[%s406_s1 + $0x28] sm:$0xff] }
   0xb   :  { %v110_v22 = vsel %vm22_vm0, %v267_v18, %v9_v0  ;;  %199 = vst [vmem:[#allocation15] sm:$0x1] %v196_v21  ;;  %v99_v28 = vsel %vm22_vm0, %v266_v25, %v9_v0  ;;  %v263_v29 = vld [vmem:[%s406_s1 + $0x20] sm:$0xff]  ;;  %v77_v33 = vsel %vm22_vm0, %v264_v30, %v9_v0  ;;  %v261_v34 = vld [vmem:[%s406_s1 + $0x10] sm:$0xff]  ;;  %v262_v35 = vld [vmem:[%s406_s1 + $0x18] sm:$0xff] }
   0xc   :  { %v222_v26 = vpack.c.bf16 %v121_v23, %v110_v22  ;;  %v221_v31 = vpack.c.bf16 %v99_v28, %v88_v27  ;;  %v66_v32 = vsel %vm22_vm0, %v263_v29, %v9_v0  ;;  %v44_v37 = vsel %vm22_vm0, %v261_v34, %v9_v0  ;;  %v18_v39 = vld [vmem:[%s406_s1] sm:$0xff]  ;;  %v260_v40 = vld [vmem:[%s406_s1 + $0x8] sm:$0xff] }
   0xd   :  { %v220_v36 = vpack.c.bf16 %v77_v33, %v66_v32  ;;  %v55_v38 = vsel %vm22_vm0, %v262_v35, %v9_v0  ;;  %v23_v42 = vsel %vm22_vm0, %v18_v39, %v9_v0  ;;  %v33_v43 = vsel %vm22_vm0, %v260_v40, %v9_v0  ;;  %v200_v45 = vld [vmem:[%s405_s0] sm:$0xff] }
   0xe   :  { %231 = vmatpush.bf16.msra.mxu0 %v224_v14  ;;  %v219_v41 = vpack.c.bf16 %v55_v38, %v44_v37  ;;  %v218_v44 = vpack.c.bf16 %v33_v43, %v23_v42  ;;  %v201_v46 = vpack.c.bf16 %v200_v45, %v200_v45 }
  0x12   :  { %232 = vmatpush.bf16.msra.mxu0 %v223_v20  ;;  %v276_v47 = vld [vmem:[#allocation15] ss:$0 sm:$0xff] }
  0x16   :  { %233 = vmatpush.bf16.msra.mxu0 %v222_v26 }
  0x1a   :  { %234 = vmatpush.bf16.msra.mxu0 %v221_v31 }
  0x1e   :  { %235 = vmatpush.bf16.msra.mxu0 %v220_v36 }
  0x22   :  { %236 = vmatpush.bf16.msra.mxu0 %v219_v41 }
  0x26   :  { %237 = vmatpush.bf16.msra.mxu0 %v218_v44 }
  0x29   :  { %238 = vmatmul.bf16.vlgmr.msra.gmra.mxu0 %v201_v46 }
  0xa6   :  { %v239_v48 = vpop.f32.mrf.mxu0 }
  0xa7   :  { %v240_v49 = vadd.f32 %v276_v47, %v239_v48 }
  0xa9   :  { %243 = vst [vmem:[#allocation12] sm:$0xff] %v240_v49 }
  0xaa   :  { %254 = dma.vmem_to_hbm [thread:$0]  %s250_s25, 128, %s252_s27, [#allocation13]  }
  0xae   :  { %v241_v50 = vpop.f32.mrf.mxu0 }
  0xaf   :  { %301 = dma.done.wait [#allocation13], 128  }
  0xb0   :  { %302 = vsyncadd [#allocation13], 4294967168 }
  0xb1   :  { %259 = vsyncpa [#allocation13], 1 }

</bundles_post_ra>
